<compile_context>
chip_gen: v5e
topology: v5e:2x2
jax: 0.10.0
libtpu: 0.0.40
codegen_flags: <defaults>
</compile_context>

<pallas_src>
import jax
import jax.numpy as jnp
from jax.experimental import pallas as pl
from jax.experimental.pallas import tpu as pltpu

_MAX_TILE_W = 64 * 1024              # cap on lanes per grid step (multiple of 128)
_TILE_VMEM_BUDGET = 12 * 1024 * 1024  # double-buffered input+output tile budget (bytes)


def _pick_tile_w(width: int, c_in: int, n_out: int, n_phase: int, itemsize: int = 4) -> int:
    """Largest width tile (multiple of 128) whose double-buffered tiles fit the budget."""
    per_lane = 2 * itemsize * (c_in + n_phase * n_out)   # 2x for double buffering
    t = min(_MAX_TILE_W, _TILE_VMEM_BUDGET // per_lane)
    t = max(128, (t // 128) * 128)
    return width if width <= t else t


def _phased_pointwise_conv_kernel(w_ref, b_ref, x_ref, o_ref):
    """All-phase pointwise (kernel_size=1) conv over one lane-dense width tile.

    w_ref: VMEM [P, N_pad, C] f32  (resident across the grid; out-ch padded to 8 sublanes)
    b_ref: VMEM [N_pad, 1]    f32  (resident)
    x_ref: VMEM [1, C, TILE_W]     (width on lanes)
    o_ref: VMEM [1, P, N, TILE_W]  (width on lanes)
    """
    n_phase = o_ref.shape[1]
    n_out = o_ref.shape[2]
    c_in = x_ref.shape[1]

    x = x_ref[0].astype(jnp.float32)      # [C, TILE_W]
    bias = b_ref[...]                     # [N_pad, 1] -> lane-broadcast

    for j in range(n_phase):              # static unroll; P is 1 (r==2) or r (tiny)
        w = w_ref[j]                      # [N_pad, C]
        # One [N_pad, TILE_W] mul/add per input channel:
        #   weight column [N_pad, 1] lane-broadcasts, x row [1, TILE_W] sublane-broadcasts.
        acc = w[:, 0:1] * x[0:1, :] + bias
        for c in range(1, c_in):
            acc = acc + w[:, c:c + 1] * x[c:c + 1, :]
        # Store the whole phase block at once (no row concatenate).
        o_ref[0, j] = acc[:n_out].astype(o_ref.dtype)


def _phased_pointwise_conv(x, w_eff, bias_pad, n_out):
    """ph[b, j, n, w] = sum_c w_eff[j, n, c] * x[b, c, w] + bias[n]   (1x1 conv, P phases)."""
    b, c, w = x.shape
    p, n_pad, c2 = w_eff.shape
    assert c2 == c and n_pad % 8 == 0

    tile_w = _pick_tile_w(w, c, n_out, p, x.dtype.itemsize)
    grid = (b, pl.cdiv(w, tile_w))

    flops = 2 * b * w * c * p * n_out
    bytes_accessed = (b * c * w + b * p * n_out * w) * x.dtype.itemsize \
        + (w_eff.size + bias_pad.size) * 4

    return pl.pallas_call(
        _phased_pointwise_conv_kernel,
        out_shape=jax.ShapeDtypeStruct((b, p, n_out, w), x.dtype),
        grid=grid,
        in_specs=[
            pl.BlockSpec((p, n_pad, c), lambda bi, wi: (0, 0, 0)),     # weights (resident)
            pl.BlockSpec((n_pad, 1), lambda bi, wi: (0, 0)),           # bias    (resident)
            pl.BlockSpec((1, c, tile_w), lambda bi, wi: (bi, 0, wi)),  # x tile
        ],
        out_specs=pl.BlockSpec((1, p, n_out, tile_w), lambda bi, wi: (bi, 0, 0, wi)),
        compiler_params=pltpu.CompilerParams(
            dimension_semantics=("parallel", "parallel"),
            vmem_limit_bytes=32 * 1024 * 1024,
        ),
        cost_estimate=pl.CostEstimate(
            flops=int(flops), transcendentals=0, bytes_accessed=int(bytes_accessed)),
    )(w_eff, bias_pad, x)


def upsample_conv1d(x, weight, bias, upscale_factor):
    """Forward pass of UpsampleConv1d.

    x:      [B, C, W]                      (NCW, like PyTorch)
    weight: [out_channels, 2*C // r, 1]    (Conv1d kernel_size=1 weight)
    bias:   [out_channels]
    returns [B, out_channels, r * W]       (NCW)
    """
    b, c_x, w_in = x.shape
    r = int(upscale_factor)
    n_out, c_conv, ksize = weight.shape
    assert ksize == 1, "Conv1d kernel_size must be 1"
    assert (2 * c_x) % r == 0, "2*in_channels must be divisible by upscale_factor"
    c_long = 2 * c_x // r
    assert c_conv == c_long, f"conv in_channels {c_conv} must equal 2*C//r = {c_long}"

    w2 = weight[:, :, 0].astype(jnp.float32)                       # [N, c_long]
    n_pad = ((n_out + 7) // 8) * 8
    bias_pad = jnp.zeros((n_pad, 1), jnp.float32).at[:n_out, 0].set(bias.astype(jnp.float32))

    if r == 2:
        # concat + shuffle with r=2 map every phase to the identity channel selection,
        # so both phases share identical weights -> compute once (P=1).
        w_eff = jnp.zeros((1, n_pad, c_x), jnp.float32).at[0, :n_out, :].set(w2)
        z = _phased_pointwise_conv(x, w_eff, bias_pad, n_out)[:, 0]   # [B, N, W]
        # TODO(synk): 2x nearest-neighbor width repeat stays in XLA (no robust Mosaic
        # f32 lane-interleave / stride-2 lane store to fuse it into the output store).
        return jnp.repeat(z, 2, axis=-1)                              # [B, N, 2W]

    # General r: fold concat + pixel-shuffle channel mapping into per-phase effective
    # weights  w_eff[j, n, cx] = sum_{c'} [(j*c_long + c') % C_x == cx] * w2[n, c'],
    # and compute ALL phases in a single pallas_call (x read from HBM once).
    src = (jnp.arange(r)[:, None] * c_long + jnp.arange(c_long)[None, :]) % c_x   # [r, c_long]
    onehot = (src[:, :, None] == jnp.arange(c_x)[None, None, :]).astype(jnp.float32)
    w_eff_nc = jnp.einsum("nc,jcx->jnx", w2, onehot)                  # [r, N, C_x]
    w_eff = jnp.zeros((r, n_pad, c_x), jnp.float32).at[:, :n_out, :].set(w_eff_nc)
    ph = _phased_pointwise_conv(x, w_eff, bias_pad, n_out)            # [B, r, N, W]
    # Interleave phases into width: out[b, n, w*r + j] = ph[b, j, n, w].
    return jnp.transpose(ph, (0, 2, 3, 1)).reshape(b, n_out, r * w_in)


if __name__ == "__main__":
    key = jax.random.PRNGKey(0)
    kx, kw, kb, kx2, kw2 = jax.random.split(key, 5)

    # Module config: conv in_channels = 4, out_channels = 6, upscale_factor = 2.
    upscale_factor = 2
    conv_in_channels = 4
    out_channels = 6
    batch = 2
    in_channels_x = conv_in_channels * upscale_factor // 2    # raw x channels = 4
    width = 16

    x = jax.random.normal(kx, (batch, in_channels_x, width), dtype=jnp.float32)
    fan_in = conv_in_channels * 1
    bound = 1.0 / (fan_in ** 0.5)
    weight = jax.random.uniform(kw, (out_channels, conv_in_channels, 1),
                                dtype=jnp.float32, minval=-bound, maxval=bound)
    bias = jax.random.uniform(kb, (out_channels,), dtype=jnp.float32,
                              minval=-bound, maxval=bound)

    fwd = jax.jit(upsample_conv1d, static_argnames=("upscale_factor",))
    out = jax.block_until_ready(fwd(x, weight, bias, upscale_factor=upscale_factor))

    # Plain-JAX reference: concat -> pixel_shuffle_1d -> 1x1 conv.
    def pixel_shuffle_1d_ref(t, r):
        bb, cs, ws = t.shape
        t = t.reshape(bb, r, cs // r, ws)
        t = jnp.transpose(t, (0, 2, 3, 1))
        return t.reshape(bb, cs // r, r * ws)

    def reference(xi, wi, bi, r):
        xs = pixel_shuffle_1d_ref(jnp.concatenate([xi, xi], axis=1), r)
        return jnp.einsum("oc,bcw->bow", wi[:, :, 0], xs) + bi[None, :, None]

    ref = reference(x, weight, bias, upscale_factor)
    assert out.shape == (batch, out_channels, upscale_factor * width), out.shape
    assert jnp.allclose(out, ref, atol=1e-5, rtol=1e-5), "r=2 mismatch vs reference"

    # Also exercise the general-r path (all phases in one pallas_call): r=4, conv_in=2.
    r2 = 4
    c_x2 = 4
    conv_in2 = 2 * c_x2 // r2
    x2 = jax.random.normal(kx2, (batch, c_x2, width), dtype=jnp.float32)
    weight2 = jax.random.uniform(kw2, (out_channels, conv_in2, 1), dtype=jnp.float32,
                                 minval=-0.7, maxval=0.7)
    bias2 = jnp.linspace(-0.5, 0.5, out_channels, dtype=jnp.float32)
    out2 = jax.block_until_ready(fwd(x2, weight2, bias2, upscale_factor=r2))
    ref2 = reference(x2, weight2, bias2, r2)
    assert out2.shape == (batch, out_channels, r2 * width), out2.shape
    assert jnp.allclose(out2, ref2, atol=1e-5, rtol=1e-5), "general-r mismatch vs reference"

    print("KERNEL_OK")
</pallas_src>

<mosaic_0001>
module attributes {stable_mosaic.version = 11 : i64} {
  func.func @_phased_pointwise_conv_kernel(%arg0: i32, %arg1: i32, %arg2: memref<1x8x4xf32, #tpu.memory_space<vmem>>, %arg3: memref<8x1xf32, #tpu.memory_space<vmem>>, %arg4: memref<1x4x16xf32, #tpu.memory_space<vmem>>, %arg5: memref<1x1x6x16xf32, #tpu.memory_space<vmem>>) attributes {dimension_semantics = [#tpu.dimension_semantics<parallel>, #tpu.dimension_semantics<parallel>], iteration_bounds = array<i64: 2, 1>, scalar_prefetch = 0 : i64, scratch_operands = 0 : i64, tpu.core_type = #tpu.core_type<tc>, window_params = [{pipeline_mode = #tpu.pipeline_mode<synchronous>, transform_indices = @transform_0, window_bounds = array<i64: 1, 8, 4>}, {pipeline_mode = #tpu.pipeline_mode<synchronous>, transform_indices = @transform_1, window_bounds = array<i64: 8, 1>}, {transform_indices = @transform_2, window_bounds = array<i64: 1, 4, 16>}, {transform_indices = @transform_3, window_bounds = array<i64: 1, 1, 6, 16>}]} {
    %c0 = arith.constant 0 : index
    %c0_0 = arith.constant 0 : index
    %c0_1 = arith.constant 0 : index
    %0 = vector.load %arg4[%c0, %c0_0, %c0_1] : memref<1x4x16xf32, #tpu.memory_space<vmem>>, vector<1x4x16xf32>
    %1 = vector.shape_cast %0 : vector<1x4x16xf32> to vector<4x16xf32>
    %c0_2 = arith.constant 0 : index
    %c0_3 = arith.constant 0 : index
    %2 = vector.load %arg3[%c0_2, %c0_3] : memref<8x1xf32, #tpu.memory_space<vmem>>, vector<8x1xf32>
    %c0_4 = arith.constant 0 : index
    %c0_5 = arith.constant 0 : index
    %c0_6 = arith.constant 0 : index
    %3 = vector.load %arg2[%c0_4, %c0_5, %c0_6] : memref<1x8x4xf32, #tpu.memory_space<vmem>>, vector<1x8x4xf32>
    %4 = vector.shape_cast %3 : vector<1x8x4xf32> to vector<8x4xf32>
    %5 = vector.extract_strided_slice %4 {offsets = [0, 0], sizes = [8, 1], strides = [1, 1]} : vector<8x4xf32> to vector<8x1xf32>
    %6 = vector.extract_strided_slice %1 {offsets = [0, 0], sizes = [1, 16], strides = [1, 1]} : vector<4x16xf32> to vector<1x16xf32>
    %7 = vector.broadcast %5 : vector<8x1xf32> to vector<8x16xf32>
    %8 = vector.broadcast %6 : vector<1x16xf32> to vector<8x16xf32>
    %9 = arith.mulf %7, %8 : vector<8x16xf32>
    %10 = vector.broadcast %2 : vector<8x1xf32> to vector<8x16xf32>
    %11 = arith.addf %9, %10 : vector<8x16xf32>
    %12 = vector.extract_strided_slice %4 {offsets = [0, 1], sizes = [8, 1], strides = [1, 1]} : vector<8x4xf32> to vector<8x1xf32>
    %13 = vector.extract_strided_slice %1 {offsets = [1, 0], sizes = [1, 16], strides = [1, 1]} : vector<4x16xf32> to vector<1x16xf32>
    %14 = vector.broadcast %12 : vector<8x1xf32> to vector<8x16xf32>
    %15 = vector.broadcast %13 : vector<1x16xf32> to vector<8x16xf32>
    %16 = arith.mulf %14, %15 : vector<8x16xf32>
    %17 = arith.addf %11, %16 : vector<8x16xf32>
    %18 = vector.extract_strided_slice %4 {offsets = [0, 2], sizes = [8, 1], strides = [1, 1]} : vector<8x4xf32> to vector<8x1xf32>
    %19 = vector.extract_strided_slice %1 {offsets = [2, 0], sizes = [1, 16], strides = [1, 1]} : vector<4x16xf32> to vector<1x16xf32>
    %20 = vector.broadcast %18 : vector<8x1xf32> to vector<8x16xf32>
    %21 = vector.broadcast %19 : vector<1x16xf32> to vector<8x16xf32>
    %22 = arith.mulf %20, %21 : vector<8x16xf32>
    %23 = arith.addf %17, %22 : vector<8x16xf32>
    %24 = vector.extract_strided_slice %4 {offsets = [0, 3], sizes = [8, 1], strides = [1, 1]} : vector<8x4xf32> to vector<8x1xf32>
    %25 = vector.extract_strided_slice %1 {offsets = [3, 0], sizes = [1, 16], strides = [1, 1]} : vector<4x16xf32> to vector<1x16xf32>
    %26 = vector.broadcast %24 : vector<8x1xf32> to vector<8x16xf32>
    %27 = vector.broadcast %25 : vector<1x16xf32> to vector<8x16xf32>
    %28 = arith.mulf %26, %27 : vector<8x16xf32>
    %29 = arith.addf %23, %28 : vector<8x16xf32>
    %30 = vector.extract_strided_slice %29 {offsets = [0, 0], sizes = [6, 16], strides = [1, 1]} : vector<8x16xf32> to vector<6x16xf32>
    %c0_7 = arith.constant 0 : index
    %c0_8 = arith.constant 0 : index
    %c0_9 = arith.constant 0 : index
    %c0_10 = arith.constant 0 : index
    %31 = vector.load %arg5[%c0_7, %c0_8, %c0_9, %c0_10] : memref<1x1x6x16xf32, #tpu.memory_space<vmem>>, vector<1x1x6x16xf32>
    %32 = vector.shape_cast %31 : vector<1x1x6x16xf32> to vector<6x16xf32>
    %33 = vector.shape_cast %30 : vector<6x16xf32> to vector<1x1x6x16xf32>
    tpu.vector_store %arg5[%c0_7, %c0_8, %c0_9, %c0_10], %33 {strides = array<i32>} : memref<1x1x6x16xf32, #tpu.memory_space<vmem>>, vector<1x1x6x16xf32>,
    return
  }
  func.func @transform_0(%arg0: i32, %arg1: i32) -> (i32, i32, i32) {
    %c0_i32 = arith.constant 0 : i32
    %c0_i32_0 = arith.constant 0 : i32
    %c0_i32_1 = arith.constant 0 : i32
    %c0_i32_2 = arith.constant 0 : i32
    return %c0_i32, %c0_i32_0, %c0_i32_1 : i32, i32, i32
  }
  func.func @transform_1(%arg0: i32, %arg1: i32) -> (i32, i32) {
    %c0_i32 = arith.constant 0 : i32
    %c0_i32_0 = arith.constant 0 : i32
    %c0_i32_1 = arith.constant 0 : i32
    return %c0_i32, %c0_i32_0 : i32, i32
  }
  func.func @transform_2(%arg0: i32, %arg1: i32) -> (i32, i32, i32) {
    %c0_i32 = arith.constant 0 : i32
    %c0_i32_0 = arith.constant 0 : i32
    return %arg0, %c0_i32, %arg1 : i32, i32, i32
  }
  func.func @transform_3(%arg0: i32, %arg1: i32) -> (i32, i32, i32, i32) {
    %c0_i32 = arith.constant 0 : i32
    %c0_i32_0 = arith.constant 0 : i32
    %c0_i32_1 = arith.constant 0 : i32
    return %arg0, %c0_i32, %c0_i32_0, %arg1 : i32, i32, i32, i32
  }
}

</mosaic_0001>

<bundles_post_ra>
// kernel: upsample_conv1d.1
= control target key start
LH: loop header
LB: loop body
LE: loop exit
PB: predicated region body
PF: predicated region fallthrough
CT: control target
= control target key end

     0   :  { %s400_s12 = smov 0   ;;  %s402_s13 = smov 0   ;;  %s439_s0 = inlined_call_operand.vmem [shape: f32[1,8,4], index: 0, kind: input, shape index: {}]   ;;  %s440_s1 = inlined_call_operand.vmem [shape: f32[8,1], index: 1, kind: input, shape index: {}]   ;;  %s441_s2 = inlined_call_operand.vmem [shape: f32[2,4,16], index: 2, kind: input, shape index: {}]   ;;  %s442_s3 = inlined_call_operand.vmem [shape: f32[2,1,6,16], index: 3, kind: output, shape index: {}]  }
   0x1   :  { %s404_s14 = smov 0  }
   0x2 LB: > { %s25_s15 = sadd.s32 1, %s370_s13  ;;  %p314_p0 = scmp.ge.s32.totalorder %s374_s14, 1  ;;  %s374_s14 = sphi %s404_s14, %s13_s14   ;;  %s370_s13 = sphi %s402_s13, %s444_s13   ;;  %s366_s12 = sphi %s400_s12, %s443_s12  }
   0x3   : > { %p27_p1 = scmp.ge.s32.totalorder %s25_s15, 2  ;;  %p155_p2 = scmp.lt.s32.totalorder %s374_s14, 3 }
   0x5   : > { %s446_s15 = smov (%p27_p1, %s25_s15), 0  ;;  %p156_p3 = pnand %p314_p0, %p155_p2 }
   0x6   : > { %p183_p4 = scmp.lt.s32.totalorder (!%p156_p3), %s366_s12, 1 }
   0x7   : > { %159 = sbr.rel (%p156_p3) target bundleno = 146 (0x92), region = 32 }
   0xc   : > { %v199_v0 = vld [vmem:[%s439_s0] sm:$0xff]  ;;  %v376_v1 = vmov 0   ;;  %v377_v2 = vmov 1   ;;  %v378_v3 = vmov 3   ;;  %v379_v5 = vmov 2   ;;  %s448_s12 = smov (!%p183_p4, %s366_s12), 1 }
   0xd   : > { %347 = vset.pattern.permute.xlu0 %v376_v1  ;;  %348 = vset.pattern.permute.xlu1 %v377_v2  ;;  %v198_v4 = vld [vmem:[%s440_s1] sm:$0xff]  ;;  %s315_s20 = sshll.u32 %s448_s12, 2  ;;  %s316_s24 = sshll.u32 %s448_s12, 3  ;;  %vm234_vm0 = vcmask 128000  }
   0xe   : > { %202 = vperm.xlu0 %347, %v199_v0   ;;  %214 = vperm.xlu1 %348, %v199_v0   ;;  %s189_s23 = scalar_lea.vmem %s441_s2, %s315_s20  ;;  %s196_s27 = scalar_lea.vmem %s442_s3, %s316_s24 }
   0xf   : > { %350 = vset.pattern.permute.xlu2 %v378_v3  ;;  %v197_v7 = vld [vmem:[%s189_s23] sm:$0xf] }
  0x10   : > { %228 = vperm.xlu2 %350, %v199_v0   ;;  %v205_v9 = vperm.slane %v197_v7, 0  ;;  %v217_v10 = vperm.slane %v197_v7, 1  ;;  %v224_v11 = vperm.slane %v197_v7, 2  ;;  %v231_v13 = vperm.slane %v197_v7, 3 }
  0x16   : > { %209 = vperm.xlu0 %347, %v198_v4   ;;  %349 = vset.pattern.permute.xlu1 %v379_v5 }
  0x17   : > { %221 = vperm.xlu1 %349, %v199_v0  }
  0x1e   : > { %351 = vset.pattern.permute.xlu0 %v378_v3 }
  0x6a   : > { %v229_v15 = vpop.permute.xlu2 %228 }
  0x6b   : > { %v232_v21 = vmul.f32 %v231_v13, %v229_v15 }
  0x80   : > { %v203_v6 = vpop.permute.xlu0 %202  ;;  %v215_v8 = vpop.permute.xlu1 %214 }
  0x81   : > { %v206_v12 = vmul.f32 %v205_v9, %v203_v6  ;;  %v218_v16 = vmul.f32 %v217_v10, %v215_v8 }
  0x88   : > { %v210_v14 = vpop.permute.xlu0 %209 }
  0x89   : > { %v212_v17 = vadd.f32 %v210_v14, %v206_v12  ;;  %v222_v18 = vpop.permute.xlu1 %221 }
  0x8a   : > { %v225_v19 = vmul.f32 %v224_v11, %v222_v18 }
  0x8b   : > { %v219_v20 = vadd.f32 %v218_v16, %v212_v17 }
  0x8d   : > { %v226_v22 = vadd.f32 %v225_v19, %v219_v20 }
  0x8f   : > { %v233_v23 = vadd.f32 %v232_v21, %v226_v22 }
  0x91   : > { %235 = vst.msk [vmem:[%s196_s27] sm:$0x3f] %vm234_vm0, %v233_v23 }
  0x92 PF: > { %s13_s14 = sadd.s32 1, %s374_s14   ;;  %s443_s12 = smov %s370_s13 }
  0x93   : > { %p10_p5 = scmp.ge.s32.totalorder %s13_s14, 4   ;;  %s444_s13 = smov %s446_s15 }
  0x95   :  { %12 = sbr.rel (!%p10_p5) target bundleno = 2 (0x2), region = 62 }

</bundles_post_ra>
